<compile_context>
chip_gen: v6e
topology: v6e:2x2x1
jax: 0.10.0
libtpu: 0.0.40
codegen_flags: <defaults>
</compile_context>

<pallas_src>
import functools

import jax
import jax.numpy as jnp
from jax.experimental import pallas as pl
from jax.experimental.pallas import tpu as pltpu

_MAX_TILE_BYTES = 4 * 1024 * 1024       # ~4 MiB/tile; in+out double-buffered ~16 MiB
_PALLAS_MIN_BYTES = 4 * 1024 * 1024     # below this, XLA's fused elementwise op wins
_LANE_CHOICES = (512, 1024, 2048, 256, 128)   # lane-dense widths (multiples of 128)
_FALLBACK_LANES = 512


def _relu_kernel(x_ref, o_ref):
    # Elementwise ReLU on the VPU; weak-typed `0` avoids materializing a
    # broadcast zeros array and works for f32/bf16/int dtypes alike.
    o_ref[...] = jnp.maximum(x_ref[...], 0)


def _round_up(n, m):
    return ((n + m - 1) // m) * m


def _sublane(dtype):
    # Minimum sublane granularity per element width: (8,128) f32, (16,128) bf16,
    # (32,128) int8/fp8.
    return {4: 8, 2: 16, 1: 32}.get(jnp.dtype(dtype).itemsize, 8)


def _choose_layout(n, sublane):
    """Factor n into a lane-dense (rows, lanes) slab, avoiding padding if possible."""
    for lanes in _LANE_CHOICES:
        rows = n // lanes
        if n % lanes == 0 and rows >= sublane and rows % sublane == 0:
            return lanes, rows, 0                       # exact factorization, no pad
    lanes = _FALLBACK_LANES                             # fallback: pad to aligned slab
    rows = max(_round_up(pl.cdiv(n, lanes), sublane), sublane)
    return lanes, rows, rows * lanes - n


def _pallas_relu_flat(flat):
    """ReLU over a flat 1-D array via a lane-dense, tiled Pallas kernel."""
    n = flat.shape[0]
    dtype = flat.dtype
    itemsize = jnp.dtype(dtype).itemsize
    sublane = _sublane(dtype)
    lanes, rows, pad = _choose_layout(n, sublane)

    if pad:
        # TODO(synk): only reached when n has no clean multiple-of-128 factor;
        # the pad + trailing slice cost one extra HBM pass each.
        flat = jnp.pad(flat, (0, pad))
    x2d = flat.reshape(rows, lanes)

    max_tile_rows = max(
        (_MAX_TILE_BYTES // (lanes * itemsize)) // sublane * sublane, sublane)
    tile_rows = min(max_tile_rows, rows)
    # Guarantee >= 2 grid steps when there is enough data so the "parallel"
    # axis can actually be split across v7x's two TensorCores (no-op v5e/v6e).
    if rows >= 2 * sublane and tile_rows > rows // 2:
        tile_rows = max((rows // 2) // sublane * sublane, sublane)
    grid_rows = pl.cdiv(rows, tile_rows)

    out = pl.pallas_call(
        _relu_kernel,
        out_shape=jax.ShapeDtypeStruct((rows, lanes), dtype),
        grid=(grid_rows,),
        in_specs=[pl.BlockSpec((tile_rows, lanes), lambda i: (i, 0))],
        out_specs=pl.BlockSpec((tile_rows, lanes), lambda i: (i, 0)),
        compiler_params=pltpu.CompilerParams(
            dimension_semantics=("parallel",),   # shard tiles across v7x's 2 TCs
            vmem_limit_bytes=32 * 1024 * 1024,
        ),
    )(x2d)

    flat_out = out.reshape(-1)
    if pad:
        flat_out = flat_out[:n]
    return flat_out


@functools.partial(jax.jit, static_argnames=("use_pallas",))
def net_forward(x, use_pallas=None):
    """Equivalent of:
        x = torch.reshape(x, (-1, 1, 2, 2))
        y = Net()(x)   # Net == single ReLU
    Returns y with shape (N, 1, 2, 2), same dtype as x.
    """
    x_nchw = jnp.reshape(x, (-1, 1, 2, 2))
    n = x_nchw.size
    if use_pallas is None:
        # Only take the Pallas path when there are several tiles' worth of data;
        # below that the pallas_call is pure launch/DMA overhead vs fused XLA.
        use_pallas = n * jnp.dtype(x_nchw.dtype).itemsize >= _PALLAS_MIN_BYTES
    if not use_pallas:
        return jnp.maximum(x_nchw, 0)
    y_flat = _pallas_relu_flat(x_nchw.reshape(-1))
    return y_flat.reshape(x_nchw.shape)


if __name__ == "__main__":
    key = jax.random.PRNGKey(0)

    # (64, 16, 16) = 16384 elements -> reshapes to (4096, 1, 2, 2).
    # Forced Pallas path: exact lane-dense (32, 512) slab, no padding,
    # 2 grid steps on the "parallel" axis.
    x = jax.random.normal(key, (64, 16, 16), dtype=jnp.float32)
    y = jax.block_until_ready(net_forward(x, use_pallas=True))
    y_ref = jnp.maximum(jnp.reshape(x, (-1, 1, 2, 2)), 0.0)
    assert y.shape == (4096, 1, 2, 2)
    assert y.dtype == x.dtype
    assert jnp.array_equal(y, y_ref), "mismatch vs reference ReLU (f32)"

    # bf16 exercises the 16-sublane layout path.
    x_bf16 = jax.random.normal(jax.random.PRNGKey(1), (128, 16, 16), dtype=jnp.bfloat16)
    y_bf16 = jax.block_until_ready(net_forward(x_bf16, use_pallas=True))
    y_bf16_ref = jnp.maximum(jnp.reshape(x_bf16, (-1, 1, 2, 2)), 0)
    assert y_bf16.dtype == jnp.bfloat16
    assert jnp.array_equal(y_bf16, y_bf16_ref), "mismatch vs reference ReLU (bf16)"

    # Size with no clean 128-multiple factorization -> padded fallback path.
    x_pad = jax.random.normal(jax.random.PRNGKey(2), (3, 4), dtype=jnp.float32)
    y_pad = jax.block_until_ready(net_forward(x_pad, use_pallas=True))
    y_pad_ref = jnp.maximum(jnp.reshape(x_pad, (-1, 1, 2, 2)), 0.0)
    assert y_pad.shape == (3, 1, 2, 2)
    assert jnp.array_equal(y_pad, y_pad_ref), "mismatch vs reference ReLU (padded)"

    # Original tiny demo shape (8, 4) -> (8, 1, 2, 2): the auto path routes to
    # XLA's fused elementwise op (Pallas would be pure overhead at this size).
    x_small = jax.random.normal(jax.random.PRNGKey(0), (8, 4), dtype=jnp.float32)
    y_small = jax.block_until_ready(net_forward(x_small))
    y_small_ref = jnp.maximum(jnp.reshape(x_small, (-1, 1, 2, 2)), 0.0)
    assert y_small.shape == (8, 1, 2, 2)
    assert jnp.array_equal(y_small, y_small_ref), "mismatch vs reference ReLU (small)"

    print("KERNEL_OK")
</pallas_src>

<mosaic_0001>
module attributes {stable_mosaic.version = 11 : i64} {
  func.func @_relu_kernel(%arg0: i32, %arg1: memref<16x512xf32, #tpu.memory_space<vmem>>, %arg2: memref<16x512xf32, #tpu.memory_space<vmem>>) attributes {dimension_semantics = [#tpu.dimension_semantics<parallel>], iteration_bounds = array<i64: 2>, scalar_prefetch = 0 : i64, scratch_operands = 0 : i64, tpu.core_type = #tpu.core_type<tc>, window_params = [{transform_indices = @transform_0, window_bounds = array<i64: 16, 512>}, {transform_indices = @transform_1, window_bounds = array<i64: 16, 512>}]} {
    %c0 = arith.constant 0 : index
    %c0_0 = arith.constant 0 : index
    %0 = vector.load %arg1[%c0, %c0_0] : memref<16x512xf32, #tpu.memory_space<vmem>>, vector<16x512xf32>
    %cst = arith.constant 0.000000e+00 : f32
    %1 = vector.broadcast %cst : f32 to vector<16x512xf32>
    %2 = arith.maximumf %0, %1 : vector<16x512xf32>
    %c0_1 = arith.constant 0 : index
    %c0_2 = arith.constant 0 : index
    %3 = vector.load %arg2[%c0_1, %c0_2] : memref<16x512xf32, #tpu.memory_space<vmem>>, vector<16x512xf32>
    tpu.vector_store %arg2[%c0_1, %c0_2], %2 {strides = array<i32>} : memref<16x512xf32, #tpu.memory_space<vmem>>, vector<16x512xf32>,
    return
  }
  func.func @transform_0(%arg0: i32) -> (i32, i32) {
    %c0_i32 = arith.constant 0 : i32
    %c0_i32_0 = arith.constant 0 : i32
    return %arg0, %c0_i32 : i32, i32
  }
  func.func @transform_1(%arg0: i32) -> (i32, i32) {
    %c0_i32 = arith.constant 0 : i32
    %c0_i32_0 = arith.constant 0 : i32
    return %arg0, %c0_i32 : i32, i32
  }
}

</mosaic_0001>

<bundles_post_ra>
// kernel: net_forward.1
= control target key start
LH: loop header
LB: loop body
LE: loop exit
PB: predicated region body
PF: predicated region fallthrough
CT: control target
= control target key end

     0   :  { %s248_s6 = smov 0   ;;  %s265_s0 = inlined_call_operand.vmem [shape: f32[32,512], index: 0, kind: input, shape index: {}]   ;;  %s266_s1 = inlined_call_operand.vmem [shape: f32[32,512], index: 1, kind: output, shape index: {}]  }
   0x1 LB: > { %s207_s7 = sadd.s32 4294967295, %s236_s6   ;;  %p211_p0 = scmp.ge.s32.totalorder %s236_s6, 1  ;;  %s236_s6 = sphi %s248_s6, %s11_s6  }
   0x2   : > { %p89_p1 = scmp.lt.s32.totalorder %s236_s6, 3 }
   0x4   : > { %p90_p2 = pnand %p211_p0, %p89_p1 }
   0x5   : > { %s212_s8 = sshll.u32 (!%p90_p2), %s207_s7, 1 }
   0x6   : > { %93 = sbr.rel (%p90_p2) target bundleno = 21 (0x15), region = 24  ;;  %p112_p3 = scmp.lt.s32.totalorder (!%p90_p2), %s212_s8, 3 }
   0xb   : > { %s268_s8 = smov (!%p112_p3, %s212_s8), 3 }
   0xc   : > { %s220_s9 = sshll.u32 %s268_s8, 5 }
   0xd   : > { %s116_s12 = scalar_lea.vmem %s265_s0, %s220_s9  ;;  %s123_s15 = scalar_lea.vmem %s266_s1, %s220_s9 }
   0xe   : > { %v125_v0 = vld [vmem:[%s116_s12] sm:$0xff]  ;;  %v126_v1 = vld [vmem:[%s116_s12 + $0x8] sm:$0xff]  ;;  %v127_v2 = vld [vmem:[%s116_s12 + $0x10] sm:$0xff] }
   0xf   : > { %v133_v3 = vmax.f32 %v125_v0, 0.0  ;;  %v134_v4 = vmax.f32 %v126_v1, 0.0  ;;  %v135_v5 = vmax.f32 %v127_v2, 0.0  ;;  %v128_v6 = vld [vmem:[%s116_s12 + $0x18] sm:$0xff]  ;;  %v129_v7 = vld [vmem:[%s116_s12 + $0x20] sm:$0xff]  ;;  %v130_v8 = vld [vmem:[%s116_s12 + $0x28] sm:$0xff] }
  0x10   : > { %v136_v9 = vmax.f32 %v128_v6, 0.0  ;;  %v137_v10 = vmax.f32 %v129_v7, 0.0  ;;  %v138_v11 = vmax.f32 %v130_v8, 0.0  ;;  %v131_v12 = vld [vmem:[%s116_s12 + $0x30] sm:$0xff]  ;;  %v132_v13 = vld [vmem:[%s116_s12 + $0x38] sm:$0xff] }
  0x11   : > { %141 = vst [vmem:[%s123_s15] sm:$0xff] %v133_v3  ;;  %142 = vst [vmem:[%s123_s15 + $0x8] sm:$0xff] %v134_v4  ;;  %v139_v14 = vmax.f32 %v131_v12, 0.0  ;;  %v140_v15 = vmax.f32 %v132_v13, 0.0 }
  0x12   : > { %143 = vst [vmem:[%s123_s15 + $0x10] sm:$0xff] %v135_v5  ;;  %144 = vst [vmem:[%s123_s15 + $0x18] sm:$0xff] %v136_v9 }
  0x13   : > { %145 = vst [vmem:[%s123_s15 + $0x20] sm:$0xff] %v137_v10  ;;  %146 = vst [vmem:[%s123_s15 + $0x28] sm:$0xff] %v138_v11 }
  0x14   : > { %147 = vst [vmem:[%s123_s15 + $0x30] sm:$0xff] %v139_v14  ;;  %148 = vst [vmem:[%s123_s15 + $0x38] sm:$0xff] %v140_v15 }
  0x15 PF: > { %s11_s6 = sadd.s32 1, %s236_s6  }
  0x16   : > { %p8_p4 = scmp.ge.s32.totalorder %s11_s6, 4  }
  0x18   :  { %10 = sbr.rel (!%p8_p4) target bundleno = 1 (0x1), region = 54 }

</bundles_post_ra>
